<compile_context>
chip_gen: v5e
topology: v5e:2x2
jax: 0.10.0
libtpu: 0.0.40
codegen_flags: <defaults>
</compile_context>

<pallas_src>
import functools

import jax
import jax.numpy as jnp
from jax import lax
from jax.experimental import pallas as pl
from jax.experimental.pallas import tpu as pltpu


def _round_up(v: int, m: int) -> int:
    return (v + m - 1) // m * m


def _pick_tile(dim: int, candidates, max_waste: float = 0.15) -> int:
    """Largest candidate tile whose padding waste on `dim` is small."""
    for c in candidates:
        if c <= dim and (_round_up(dim, c) - dim) <= max_waste * dim:
            return c
    return candidates[-1]


# --------------------------------------------------------------------------- #
# Kernels
# --------------------------------------------------------------------------- #
def _matmul_bias_kernel_f32out(x_ref, wt_ref, b_ref, o_ref, *, precision):
    """f32 output: accumulate directly into the resident output block."""
    k = pl.program_id(2)

    @pl.when(k == 0)
    def _init():
        o_ref[...] = jnp.zeros_like(o_ref)

    o_ref[...] += jnp.dot(
        x_ref[...], wt_ref[...],
        preferred_element_type=jnp.float32, precision=precision)

    @pl.when(k == pl.num_programs(2) - 1)
    def _epilogue():
        o_ref[...] += b_ref[...]


def _matmul_bias_kernel_acc(x_ref, wt_ref, b_ref, o_ref, acc_ref, *, precision):
    """Low-precision output: f32 VMEM accumulator, cast once in the epilogue."""
    k = pl.program_id(2)

    @pl.when(k == 0)
    def _init():
        acc_ref[...] = jnp.zeros_like(acc_ref)

    acc_ref[...] += jnp.dot(
        x_ref[...], wt_ref[...],
        preferred_element_type=jnp.float32, precision=precision)

    @pl.when(k == pl.num_programs(2) - 1)
    def _epilogue():
        o_ref[...] = (acc_ref[...] + b_ref[...]).astype(o_ref.dtype)


# --------------------------------------------------------------------------- #
# Wrapper with cached, pre-transposed / pre-padded parameters
# --------------------------------------------------------------------------- #
class PallasLinear:
    """y = x @ W^T + b. Weight is transposed/padded/cast once at construction."""

    def __init__(self, weight, bias, *, compute_dtype=jnp.bfloat16,
                 tm=256, tn=512, tk=2048):
        Cout, Cin = weight.shape
        self.Cin, self.Cout = Cin, Cout
        self.compute_dtype = jnp.dtype(compute_dtype)
        # f32 operands: HIGHEST so the MXU does not silently decompose to bf16.
        self.precision = (lax.Precision.HIGHEST
                          if self.compute_dtype == jnp.dtype(jnp.float32)
                          else lax.Precision.DEFAULT)

        Kp = _round_up(Cin, 128)
        Np = _round_up(Cout, 128)

        # K tile: take the whole (padded) contraction when it fits the budget.
        self.tk = min(tk, Kp)
        Kp = _round_up(Kp, self.tk)

        # N tile: clamp, and keep >= 2 N blocks when possible so both v7x
        # TensorCores get work ('parallel' axes only help with >= 2 blocks).
        tn = min(tn, Np)
        if Np // tn < 2 and tn >= 256:
            tn = max(128, tn // 2)
        self.tn = tn
        Np = _round_up(Np, self.tn)

        self.Kp, self.Np = Kp, Np
        self.tm_default = tm

        # Hoisted, cached parameter prep (done once, not per forward call).
        w_t = jnp.asarray(weight)
        if w_t.dtype != self.compute_dtype:
            w_t = w_t.astype(self.compute_dtype)
        w_t = w_t.T                                   # [Cin, Cout], K leading
        pad_k, pad_n = Kp - Cin, Np - Cout
        if pad_k or pad_n:
            w_t = jnp.pad(w_t, ((0, pad_k), (0, pad_n)))
        self.w_t = w_t

        b = jnp.asarray(bias).astype(jnp.float32)
        if pad_n:
            b = jnp.pad(b, ((0, pad_n),))
        self.b = b.reshape(1, Np)

    def __call__(self, x):
        orig_shape = x.shape
        if x.ndim > 2:                                # nn.Linear leading dims
            x = x.reshape(-1, orig_shape[-1])
        B, Cin = x.shape
        assert Cin == self.Cin, (Cin, self.Cin)
        out_dtype = x.dtype

        # Adaptive M tile: avoid the "pad 260 -> 512" blowup.
        Bp = _round_up(B, 8)
        candidates = sorted({self.tm_default, 256, 128, 64, 32, 16, 8},
                            reverse=True)
        tm = _pick_tile(Bp, candidates)
        Bp = _round_up(Bp, tm)

        xc = x
        if xc.dtype != self.compute_dtype:
            xc = xc.astype(self.compute_dtype)
        if Bp != B or self.Kp != Cin:
            xc = jnp.pad(xc, ((0, Bp - B), (0, self.Kp - Cin)))

        tn, tk, Np, Kp = self.tn, self.tk, self.Np, self.Kp
        grid = (Bp // tm, Np // tn, Kp // tk)

        f32_out = out_dtype == jnp.dtype(jnp.float32)
        kernel = functools.partial(
            _matmul_bias_kernel_f32out if f32_out else _matmul_bias_kernel_acc,
            precision=self.precision)
        scratch = [] if f32_out else [pltpu.VMEM((tm, tn), jnp.float32)]

        # VMEM budget from the actual tile footprint; cap for v7x (64 MiB VMEM).
        cbytes = self.compute_dtype.itemsize
        obytes = jnp.dtype(out_dtype).itemsize
        vmem_needed = 2 * (tm * tk * cbytes + tk * tn * cbytes + tn * 4
                           + tm * tn * obytes)
        if not f32_out:
            vmem_needed += tm * tn * 4
        vmem_limit = min(max(int(vmem_needed * 1.5), 32 * 1024 * 1024),
                         48 * 1024 * 1024)

        out_padded = pl.pallas_call(
            kernel,
            out_shape=jax.ShapeDtypeStruct((Bp, Np), out_dtype),
            grid_spec=pltpu.PrefetchScalarGridSpec(
                num_scalar_prefetch=0,
                grid=grid,
                in_specs=[
                    pl.BlockSpec((tm, tk), lambda i, j, k: (i, k)),  # x tile
                    pl.BlockSpec((tk, tn), lambda i, j, k: (k, j)),  # W^T tile
                    pl.BlockSpec((1, tn), lambda i, j, k: (0, j)),   # bias tile
                ],
                out_specs=pl.BlockSpec((tm, tn), lambda i, j, k: (i, j)),
                scratch_shapes=scratch,
            ),
            compiler_params=pltpu.CompilerParams(
                # M/N parallel -> megacore sharding on v7x; K is the reduction.
                dimension_semantics=("parallel", "parallel", "arbitrary"),
                vmem_limit_bytes=vmem_limit,
            ),
        )(xc, self.w_t, self.b)

        out = out_padded[:B, :self.Cout]
        if len(orig_shape) > 2:
            out = out.reshape(*orig_shape[:-1], self.Cout)
        return out


def linear_pallas(x, weight, bias, *, compute_dtype=jnp.bfloat16):
    """One-shot convenience wrapper (parameter prep is NOT cached here)."""
    return PallasLinear(weight, bias, compute_dtype=compute_dtype)(x)


if __name__ == "__main__":
    # Small shapes consistent with AllReduce(in_channels, out_channels).
    batch = 8
    in_channels = 32
    out_channels = 32

    key = jax.random.PRNGKey(0)
    kx, kw, kb = jax.random.split(key, 3)

    x = jax.random.normal(kx, (batch, in_channels), dtype=jnp.float32)
    # Deterministic parameter init (mimic PyTorch's uniform(-1/sqrt(fan_in), .)).
    bound = 1.0 / (in_channels ** 0.5)
    weight = jax.random.uniform(
        kw, (out_channels, in_channels), minval=-bound, maxval=bound,
        dtype=jnp.float32)
    bias = jax.random.uniform(
        kb, (out_channels,), minval=-bound, maxval=bound, dtype=jnp.float32)

    y_ref = x @ weight.T + bias

    # 1) f32-operand path (tight correctness check).
    lin_f32 = PallasLinear(weight, bias, compute_dtype=jnp.float32)
    y = jax.block_until_ready(lin_f32(x))
    assert y.shape == (batch, out_channels)
    assert jnp.allclose(y, y_ref, atol=1e-5, rtol=1e-5)

    # 2) Default bf16-operand path (MXU-rate production config), looser check.
    lin_bf16 = PallasLinear(weight, bias)          # compute_dtype=bf16 default
    y_bf16 = jax.block_until_ready(lin_bf16(x))
    assert y_bf16.shape == (batch, out_channels)
    assert jnp.allclose(y_bf16, y_ref, atol=5e-2, rtol=5e-2)

    print("KERNEL_OK")
</pallas_src>

<mosaic_0001>
module attributes {stable_mosaic.version = 11 : i64} {
  func.func @_matmul_bias_kernel_f32out(%arg0: i32, %arg1: i32, %arg2: i32, %arg3: memref<8x128xf32, #tpu.memory_space<vmem>>, %arg4: memref<128x128xf32, #tpu.memory_space<vmem>>, %arg5: memref<1x128xf32, #tpu.memory_space<vmem>>, %arg6: memref<8x128xf32, #tpu.memory_space<vmem>>) attributes {dimension_semantics = [#tpu.dimension_semantics<parallel>, #tpu.dimension_semantics<parallel>, #tpu.dimension_semantics<arbitrary>], iteration_bounds = array<i64: 1, 1, 1>, scalar_prefetch = 0 : i64, scratch_operands = 0 : i64, tpu.core_type = #tpu.core_type<tc>, window_params = [{transform_indices = @transform_0, window_bounds = array<i64: 8, 128>}, {transform_indices = @transform_1, window_bounds = array<i64: 128, 128>}, {transform_indices = @transform_2, window_bounds = array<i64: 1, 128>}, {transform_indices = @transform_3, window_bounds = array<i64: 8, 128>}]} {
    %c0_i32 = arith.constant 0 : i32
    %0 = arith.cmpi eq, %arg2, %c0_i32 : i32
    %1 = arith.extui %0 : i1 to i32
    %c0_i32_0 = arith.constant 0 : i32
    %2 = arith.cmpi ne, %1, %c0_i32_0 : i32
    scf.if %2 {
      %cst_10 = arith.constant 0.000000e+00 : f32
      %12 = vector.broadcast %cst_10 : f32 to vector<8x128xf32>
      %c0_11 = arith.constant 0 : index
      %c0_12 = arith.constant 0 : index
      %13 = vector.load %arg6[%c0_11, %c0_12] : memref<8x128xf32, #tpu.memory_space<vmem>>, vector<8x128xf32>
      tpu.vector_store %arg6[%c0_11, %c0_12], %12 {strides = array<i32>} : memref<8x128xf32, #tpu.memory_space<vmem>>, vector<8x128xf32>,
    } else {
    }
    %c0 = arith.constant 0 : index
    %c0_1 = arith.constant 0 : index
    %3 = vector.load %arg6[%c0, %c0_1] : memref<8x128xf32, #tpu.memory_space<vmem>>, vector<8x128xf32>
    %c0_2 = arith.constant 0 : index
    %c0_3 = arith.constant 0 : index
    %4 = vector.load %arg3[%c0_2, %c0_3] : memref<8x128xf32, #tpu.memory_space<vmem>>, vector<8x128xf32>
    %c0_4 = arith.constant 0 : index
    %c0_5 = arith.constant 0 : index
    %5 = vector.load %arg4[%c0_4, %c0_5] : memref<128x128xf32, #tpu.memory_space<vmem>>, vector<128x128xf32>
    %cst = arith.constant dense<0.000000e+00> : vector<8x128xf32>
    %6 = tpu.matmul %4, %5, %cst {dimension_numbers = #tpu.dot_dimension_numbers<[1], [0], [0], [1], [0, 0, 1, 1], [], []>, precision = #tpu.contract_precision<fp32>} : vector<8x128xf32>, vector<128x128xf32>, vector<8x128xf32> -> vector<8x128xf32>
    %7 = arith.addf %3, %6 : vector<8x128xf32>
    %c0_6 = arith.constant 0 : index
    %c0_7 = arith.constant 0 : index
    %8 = vector.load %arg6[%c0_6, %c0_7] : memref<8x128xf32, #tpu.memory_space<vmem>>, vector<8x128xf32>
    tpu.vector_store %arg6[%c0_6, %c0_7], %7 {strides = array<i32>} : memref<8x128xf32, #tpu.memory_space<vmem>>, vector<8x128xf32>,
    %c0_i32_8 = arith.constant 0 : i32
    %9 = arith.cmpi eq, %arg2, %c0_i32_8 : i32
    %10 = arith.extui %9 : i1 to i32
    %c0_i32_9 = arith.constant 0 : i32
    %11 = arith.cmpi ne, %10, %c0_i32_9 : i32
    scf.if %11 {
      %c0_10 = arith.constant 0 : index
      %c0_11 = arith.constant 0 : index
      %12 = vector.load %arg6[%c0_10, %c0_11] : memref<8x128xf32, #tpu.memory_space<vmem>>, vector<8x128xf32>
      %c0_12 = arith.constant 0 : index
      %c0_13 = arith.constant 0 : index
      %13 = vector.load %arg5[%c0_12, %c0_13] : memref<1x128xf32, #tpu.memory_space<vmem>>, vector<1x128xf32>
      %14 = vector.broadcast %13 : vector<1x128xf32> to vector<8x128xf32>
      %15 = arith.addf %12, %14 : vector<8x128xf32>
      %c0_14 = arith.constant 0 : index
      %c0_15 = arith.constant 0 : index
      %16 = vector.load %arg6[%c0_14, %c0_15] : memref<8x128xf32, #tpu.memory_space<vmem>>, vector<8x128xf32>
      tpu.vector_store %arg6[%c0_14, %c0_15], %15 {strides = array<i32>} : memref<8x128xf32, #tpu.memory_space<vmem>>, vector<8x128xf32>,
    } else {
    }
    return
  }
  func.func @transform_0(%arg0: i32, %arg1: i32, %arg2: i32) -> (i32, i32) {
    %c0_i32 = arith.constant 0 : i32
    return %arg0, %arg2 : i32, i32
  }
  func.func @transform_1(%arg0: i32, %arg1: i32, %arg2: i32) -> (i32, i32) {
    %c0_i32 = arith.constant 0 : i32
    return %arg2, %arg1 : i32, i32
  }
  func.func @transform_2(%arg0: i32, %arg1: i32, %arg2: i32) -> (i32, i32) {
    %c0_i32 = arith.constant 0 : i32
    %c0_i32_0 = arith.constant 0 : i32
    return %c0_i32, %arg1 : i32, i32
  }
  func.func @transform_3(%arg0: i32, %arg1: i32, %arg2: i32) -> (i32, i32) {
    %c0_i32 = arith.constant 0 : i32
    return %arg0, %arg1 : i32, i32
  }
}

</mosaic_0001>

<bundles_post_ra>
// kernel: tpu_custom_call.1
= control target key start
LH: loop header
LB: loop body
LE: loop exit
PB: predicated region body
PF: predicated region fallthrough
CT: control target
= control target key end

     0   :  { %8 = vsyncpa [#allocation3], 0  ;;  %s799_s0 = inlined_call_operand.hbm [shape: f32[8,128], index: 0, kind: input, shape index: {}]   ;;  %s800_s1 = inlined_call_operand.hbm [shape: f32[128,128], index: 1, kind: input, shape index: {}]   ;;  %s801_s2 = inlined_call_operand.vmem [shape: f32[1,128], index: 2, kind: input, shape index: {}]   ;;  %s802_s3 = inlined_call_operand.hbm [shape: f32[8,128], index: 3, kind: output, shape index: {}]  }
   0x1   :  { %9 = vsyncpa [#allocation6], 0 }
   0x2   :  { %10 = vsyncpa [#allocation4], 0  ;;  %s16_s14 = sshll.u32 %s799_s0, 4  ;;  %s524_s15 = smov [#allocation2]   ;;  %s17_s14 = int_to_ptr.hbm [resolvable:$true] %s16_s14 }
   0x3   :  { %s18_s16 = sshll.u32 %s524_s15, 4  ;;  %s26_s19 = sshll.u32 %s800_s1, 4  ;;  %s19_s16 = int_to_ptr.vmem [resolvable:$true] %s18_s16  ;;  %s27_s19 = int_to_ptr.hbm [resolvable:$true] %s26_s19 }
   0x4   :  { %21 = dma.hbm_to_vmem [thread:$0]  %s17_s14, 128, %s19_s16, [#allocation3]  }
   0x5   :  { %s525_s20 = smov [#allocation5]   ;;  %s526_s22 = smov 128  }
   0x6   :  { %s28_s21 = sshll.u32 %s525_s20, 4  ;;  %s527_s23 = smov 8   ;;  %s29_s21 = int_to_ptr.vmem [resolvable:$true] %s28_s21 }
   0x7   :  { %34 = dma.hbm_to_vmem [thread:$0]  %s27_s19, 2048, %s29_s21, [#allocation6], %s526_s22, %s526_s22, %s527_s23  }
   0x8   :  { %518 = dma.done.wait [#allocation3], 128  }
   0x9   :  { %519 = vsyncadd [#allocation3], 4294967168 }
   0xa   :  { %520 = dma.done.wait [#allocation6], 2048  }
   0xb   :  { %521 = vsyncadd [#allocation6], 4294965248  ;;  %v67_v0 = vld [vmem:[#allocation5 + $0x78] sm:$0xff]  ;;  %v66_v1 = vld [vmem:[#allocation5 + $0x70] sm:$0xff]  ;;  %s528_s24 = smov [#allocation7]   ;;  %s428_s28 = sshll.u32 %s802_s3, 4  ;;  %s429_s28 = int_to_ptr.hbm [resolvable:$true] %s428_s28 }
   0xc   :  { %v65_v2 = vld [vmem:[#allocation5 + $0x68] sm:$0xff]  ;;  %v555_v3 = vand.u32 4294901760, %v67_v0  ;;  %v557_v4 = vand.u32 4294901760, %v66_v1  ;;  %v64_v6 = vld [vmem:[#allocation5 + $0x60] sm:$0xff]  ;;  %v63_v7 = vld [vmem:[#allocation5 + $0x58] sm:$0xff]  ;;  %s426_s25 = sshll.u32 %s528_s24, 4  ;;  %s427_s25 = int_to_ptr.vmem [resolvable:$true] %s426_s25 }
   0xd   :  { %v559_v5 = vand.u32 4294901760, %v65_v2  ;;  %v62_v8 = vld [vmem:[#allocation5 + $0x50] sm:$0xff]  ;;  %v561_v9 = vand.u32 4294901760, %v64_v6  ;;  %v563_v10 = vand.u32 4294901760, %v63_v7  ;;  %v61_v12 = vld [vmem:[#allocation5 + $0x48] sm:$0xff]  ;;  %v60_v13 = vld [vmem:[#allocation5 + $0x40] sm:$0xff] }
   0xe   :  { %v565_v11 = vand.u32 4294901760, %v62_v8  ;;  %69 = vmatpush.msra.mxu0 %v555_v3  ;;  %v569_v14 = vsub.f32 %v67_v0, %v555_v3  ;;  %v572_v15 = vsub.f32 %v66_v1, %v557_v4  ;;  %v577_v17 = vand.u32 4294901760, %v61_v12  ;;  %v59_v18 = vld [vmem:[#allocation5 + $0x38] sm:$0xff]  ;;  %265 = vmatpush.msra.mxu3 %v555_v3  ;;  %v58_v26 = vld [vmem:[#allocation5 + $0x30] sm:$0xff]  ;;  %v57_v36 = vld [vmem:[#allocation5 + $0x28] sm:$0xff] }
   0xf   :  { %v575_v16 = vsub.f32 %v65_v2, %v559_v5  ;;  %v581_v19 = vsub.f32 %v64_v6, %v561_v9  ;;  %v584_v20 = vsub.f32 %v63_v7, %v563_v10  ;;  %v593_v25 = vand.u32 4294901760, %v60_v13  ;;  %v56_v42 = vld [vmem:[#allocation5 + $0x20] sm:$0xff]  ;;  %v55_v47 = vld [vmem:[#allocation5 + $0x18] sm:$0xff]  ;;  %v54_v55 = vld [vmem:[#allocation5 + $0x10] sm:$0xff] }
  0x10   :  { %v587_v21 = vsub.f32 %v62_v8, %v565_v11  ;;  %71 = vmatpush.msra.mxu0 %v557_v4  ;;  %v111_v22 = vand.u32 4294901760, %v569_v14  ;;  %v117_v23 = vand.u32 4294901760, %v572_v15  ;;  %212 = vmatpush.msra.mxu2 %v569_v14  ;;  %v597_v28 = vand.u32 4294901760, %v59_v18  ;;  %v53_v60 = vld [vmem:[#allocation5 + $0x8] sm:$0xff]  ;;  %v52_v1 = vld [vmem:[#allocation5] sm:$0xff]  ;;  %v51_v7 = vld [vmem:[#allocation2] sm:$0xff] }
  0x11   :  { %v123_v24 = vand.u32 4294901760, %v575_v16  ;;  %v129_v27 = vand.u32 4294901760, %v581_v19  ;;  %v600_v29 = vsub.f32 %v61_v12, %v577_v17  ;;  %267 = vmatpush.msra.mxu3 %v557_v4  ;;  %v135_v33 = vand.u32 4294901760, %v584_v20 }
  0x12   :  { %73 = vmatpush.msra.mxu0 %v559_v5  ;;  %v112_v30 = vsub.f32 %v569_v14, %v111_v22  ;;  %v118_v31 = vsub.f32 %v572_v15, %v117_v23  ;;  %215 = vmatpush.msra.mxu2 %v572_v15  ;;  %v141_v34 = vand.u32 4294901760, %v587_v21  ;;  %v616_v35 = vand.u32 4294901760, %v58_v26 }
  0x13   :  { %v124_v32 = vsub.f32 %v575_v16, %v123_v24  ;;  %269 = vmatpush.msra.mxu3 %v559_v5  ;;  %v130_v39 = vsub.f32 %v581_v19, %v129_v27  ;;  %v624_v40 = vsub.f32 %v60_v13, %v593_v25  ;;  %v147_v41 = vand.u32 4294901760, %v600_v29 }
  0x14   :  { %v113_v37 = vand.u32 4294901760, %v112_v30  ;;  %75 = vmatpush.msra.mxu0 %v561_v9  ;;  %v119_v38 = vand.u32 4294901760, %v118_v31  ;;  %218 = vmatpush.msra.mxu2 %v575_v16  ;;  %v136_v44 = vsub.f32 %v584_v20, %v135_v33  ;;  %v633_v45 = vand.u32 4294901760, %v57_v36 }
  0x15   :  { %271 = vmatpush.msra.mxu3 %v561_v9  ;;  %v125_v43 = vand.u32 4294901760, %v124_v32  ;;  %v636_v46 = vsub.f32 %v59_v18, %v597_v28  ;;  %v142_v48 = vsub.f32 %v587_v21, %v141_v34  ;;  %v131_v49 = vand.u32 4294901760, %v130_v39 }
  0x16   :  { %114 = vmatpush.msra.mxu1 %v113_v37  ;;  %77 = vmatpush.msra.mxu0 %v563_v10  ;;  %v153_v50 = vand.u32 4294901760, %v624_v40  ;;  %v645_v51 = vand.u32 4294901760, %v56_v42  ;;  %v648_v52 = vsub.f32 %v58_v26, %v616_v35  ;;  %v148_v53 = vsub.f32 %v600_v29, %v147_v41 }
  0x17   :  { %221 = vmatpush.msra.mxu2 %v581_v19  ;;  %273 = vmatpush.msra.mxu3 %v563_v10  ;;  %v653_v54 = vand.u32 4294901760, %v55_v47  ;;  %v137_v56 = vand.u32 4294901760, %v136_v44  ;;  %v159_v57 = vand.u32 4294901760, %v636_v46  ;;  %v660_v58 = vsub.f32 %v57_v36, %v633_v45 }
  0x18   :  { %120 = vmatpush.msra.mxu1 %v119_v38  ;;  %79 = vmatpush.msra.mxu0 %v565_v11  ;;  %v143_v59 = vand.u32 4294901760, %v142_v48  ;;  %v154_v61 = vsub.f32 %v624_v40, %v153_v50  ;;  %v165_v62 = vand.u32 4294901760, %v648_v52  ;;  %v669_v63 = vand.u32 4294901760, %v54_v55 }
  0x19   :  { %224 = vmatpush.msra.mxu2 %v584_v20  ;;  %275 = vmatpush.msra.mxu3 %v565_v11  ;;  %v672_v0 = vsub.f32 %v56_v42, %v645_v51  ;;  %v149_v2 = vand.u32 4294901760, %v148_v53  ;;  %v675_v6 = vsub.f32 %v55_v47, %v653_v54  ;;  %v160_v8 = vsub.f32 %v636_v46, %v159_v57  ;;  %v445_v20 = vld [vmem:[%s801_s2] ss:$0 sm:$0xff] }
  0x1a   :  { %126 = vmatpush.msra.mxu1 %v125_v43  ;;  %81 = vmatpush.msra.mxu0 %v577_v17  ;;  %v171_v12 = vand.u32 4294901760, %v660_v58  ;;  %v684_v13 = vand.u32 4294901760, %v53_v60  ;;  %v686_v18 = vand.u32 4294901760, %v51_v7  ;;  %v688_v26 = vand.u32 4294901760, %v52_v1 }
  0x1b   :  { %227 = vmatpush.msra.mxu2 %v587_v21  ;;  %277 = vmatpush.msra.mxu3 %v577_v17  ;;  %v155_v30 = vand.u32 4294901760, %v154_v61  ;;  %v166_v31 = vsub.f32 %v648_v52, %v165_v62  ;;  %v177_v32 = vand.u32 4294901760, %v672_v0  ;;  %v698_v36 = vsub.f32 %v54_v55, %v669_v63 }
  0x1c   :  { %132 = vmatpush.msra.mxu1 %v131_v49  ;;  %83 = vmatpush.msra.mxu0 %v593_v25  ;;  %v183_v37 = vand.u32 4294901760, %v675_v6  ;;  %v161_v38 = vand.u32 4294901760, %v160_v8  ;;  %v172_v39 = vsub.f32 %v660_v58, %v171_v12  ;;  %v708_v42 = vsub.f32 %v53_v60, %v684_v13 }
  0x1d   :  { %230 = vmatpush.msra.mxu2 %v600_v29  ;;  %279 = vmatpush.msra.mxu3 %v593_v25  ;;  %v101_v43 = vsub.f32 %v51_v7, %v686_v18  ;;  %v167_v44 = vand.u32 4294901760, %v166_v31  ;;  %v178_v47 = vsub.f32 %v672_v0, %v177_v32  ;;  %v189_v48 = vand.u32 4294901760, %v698_v36 }
  0x1e   :  { %138 = vmatpush.msra.mxu1 %v137_v56  ;;  %85 = vmatpush.msra.mxu0 %v597_v28  ;;  %v719_v49 = vsub.f32 %v52_v1, %v688_v26  ;;  %v173_v53 = vand.u32 4294901760, %v172_v39  ;;  %v184_v55 = vsub.f32 %v675_v6, %v183_v37  ;;  %v195_v56 = vand.u32 4294901760, %v708_v42 }
  0x1f   :  { %233 = vmatpush.msra.mxu2 %v624_v40  ;;  %281 = vmatpush.msra.mxu3 %v597_v28  ;;  %v179_v60 = vand.u32 4294901760, %v178_v47  ;;  %v190_v61 = vsub.f32 %v698_v36, %v189_v48 }
  0x20   :  { %144 = vmatpush.msra.mxu1 %v143_v59  ;;  %87 = vmatpush.msra.mxu0 %v616_v35  ;;  %v102_v59 = vand.u32 4294901760, %v101_v43  ;;  %v201_v1 = vand.u32 4294901760, %v719_v49  ;;  %v196_v7 = vsub.f32 %v708_v42, %v195_v56 }
  0x21   :  { %236 = vmatpush.msra.mxu2 %v636_v46  ;;  %283 = vmatpush.msra.mxu3 %v616_v35 }
  0x22   :  { %150 = vmatpush.msra.mxu1 %v149_v2  ;;  %89 = vmatpush.msra.mxu0 %v633_v45  ;;  %v185_v2 = vand.u32 4294901760, %v184_v55  ;;  %v103_v8 = vsub.f32 %v101_v43, %v102_v59  ;;  %v202_v31 = vsub.f32 %v719_v49, %v201_v1 }
  0x23   :  { %239 = vmatpush.msra.mxu2 %v648_v52  ;;  %285 = vmatpush.msra.mxu3 %v633_v45 }
  0x24   :  { %156 = vmatpush.msra.mxu1 %v155_v30  ;;  %91 = vmatpush.msra.mxu0 %v645_v51  ;;  %v191_v30 = vand.u32 4294901760, %v190_v61  ;;  %v104_v39 = vand.u32 4294901760, %v103_v8 }
  0x25   :  { %242 = vmatpush.msra.mxu2 %v660_v58  ;;  %287 = vmatpush.msra.mxu3 %v645_v51 }
  0x26   :  { %162 = vmatpush.msra.mxu1 %v161_v38  ;;  %93 = vmatpush.msra.mxu0 %v653_v54  ;;  %v197_v38 = vand.u32 4294901760, %v196_v7 }
  0x27   :  { %245 = vmatpush.msra.mxu2 %v672_v0  ;;  %289 = vmatpush.msra.mxu3 %v653_v54 }
  0x28   :  { %168 = vmatpush.msra.mxu1 %v167_v44  ;;  %95 = vmatpush.msra.mxu0 %v669_v63  ;;  %v203_v44 = vand.u32 4294901760, %v202_v31 }
  0x29   :  { %248 = vmatpush.msra.mxu2 %v675_v6  ;;  %291 = vmatpush.msra.mxu3 %v669_v63 }
  0x2a   :  { %174 = vmatpush.msra.mxu1 %v173_v53  ;;  %97 = vmatpush.msra.mxu0 %v684_v13 }
  0x2b   :  { %251 = vmatpush.msra.mxu2 %v698_v36  ;;  %293 = vmatpush.msra.mxu3 %v684_v13 }
  0x2c   :  { %180 = vmatpush.msra.mxu1 %v179_v60  ;;  %99 = vmatpush.msra.mxu0 %v688_v26 }
  0x2d   :  { %254 = vmatpush.msra.mxu2 %v708_v42  ;;  %295 = vmatpush.msra.mxu3 %v688_v26 }
  0x2e   :  { %306 = vmatpush.msrb.mxu0 %v111_v22  ;;  %186 = vmatpush.msra.mxu1 %v185_v2 }
  0x2f   :  { %257 = vmatpush.msra.mxu2 %v719_v49  ;;  %299 = vmatmul.f32.vlgmr.msra.gmra.mxu3 %v102_v59 }
  0x30   :  { %310 = vmatpush.msrb.mxu0 %v117_v23  ;;  %192 = vmatpush.msra.mxu1 %v191_v30 }
  0x31   :  { %260 = vmatmul.f32.vlgmr.msra.gmra.mxu2 %v101_v43  ;;  %105 = vmatmul.f32.vlgmr.msra.gmra.mxu0 %v104_v39 }
  0x32   :  { %314 = vmatpush.msrb.mxu0 %v123_v24  ;;  %198 = vmatpush.msra.mxu1 %v197_v38 }
  0x34   :  { %318 = vmatpush.msrb.mxu0 %v129_v27  ;;  %204 = vmatpush.msra.mxu1 %v203_v44 }
  0x35   :  { %206 = vmatmul.f32.vlgmr.msra.gmra.mxu1 %v686_v18 }
  0x36   :  { %373 = vmatpush.msrb.mxu1 %v555_v3  ;;  %322 = vmatpush.msrb.mxu0 %v135_v33 }
  0x38   :  { %375 = vmatpush.msrb.mxu1 %v557_v4  ;;  %326 = vmatpush.msrb.mxu0 %v141_v34 }
  0x3a   :  { %377 = vmatpush.msrb.mxu1 %v559_v5  ;;  %330 = vmatpush.msrb.mxu0 %v147_v41 }
  0x3c   :  { %379 = vmatpush.msrb.mxu1 %v561_v9  ;;  %334 = vmatpush.msrb.mxu0 %v153_v50 }
  0x3e   :  { %381 = vmatpush.msrb.mxu1 %v563_v10  ;;  %338 = vmatpush.msrb.mxu0 %v159_v57 }
  0x40   :  { %383 = vmatpush.msrb.mxu1 %v565_v11  ;;  %342 = vmatpush.msrb.mxu0 %v165_v62 }
  0x42   :  { %385 = vmatpush.msrb.mxu1 %v577_v17  ;;  %346 = vmatpush.msrb.mxu0 %v171_v12 }
  0x44   :  { %387 = vmatpush.msrb.mxu1 %v593_v25  ;;  %350 = vmatpush.msrb.mxu0 %v177_v32 }
  0x46   :  { %389 = vmatpush.msrb.mxu1 %v597_v28  ;;  %354 = vmatpush.msrb.mxu0 %v183_v37 }
  0x48   :  { %391 = vmatpush.msrb.mxu1 %v616_v35  ;;  %358 = vmatpush.msrb.mxu0 %v189_v48 }
  0x4a   :  { %393 = vmatpush.msrb.mxu1 %v633_v45  ;;  %362 = vmatpush.msrb.mxu0 %v195_v56 }
  0x4c   :  { %395 = vmatpush.msrb.mxu1 %v645_v51  ;;  %366 = vmatpush.msrb.mxu0 %v201_v1 }
  0x4d   :  { %368 = vmatmul.f32.vlgmr.msrb.gmra.mxu0 %v686_v18 }
  0x4e   :  { %397 = vmatpush.msrb.mxu1 %v653_v54 }
  0x50   :  { %399 = vmatpush.msrb.mxu1 %v669_v63 }
  0x52   :  { %401 = vmatpush.msrb.mxu1 %v684_v13 }
  0x54   :  { %403 = vmatpush.msrb.mxu1 %v688_v26 }
  0x55   :  { %405 = vmatmul.f32.vlgmr.msrb.gmra.mxu1 %v686_v18 }
  0xae   :  { %v106_v4 = vpop.f32.mrf.mxu0 }
  0xb2   :  { %v207_v3 = vpop.f32.mrf.mxu1  ;;  %v300_v11 = vpop.f32.mrf.mxu3 }
  0xb3   :  { %v208_v5 = vadd.f32 %v207_v3, %v106_v4 }
  0xb4   :  { %v261_v9 = vpop.f32.mrf.mxu2 }
  0xb5   :  { %v262_v10 = vadd.f32 %v261_v9, %v208_v5 }
  0xb7   :  { %v301_v14 = vadd.f32 %v300_v11, %v262_v10 }
  0xca   :  { %v369_v15 = vpop.f32.mrf.mxu0 }
  0xcb   :  { %v370_v16 = vadd.f32 %v369_v15, %v301_v14 }
  0xd2   :  { %v406_v17 = vpop.f32.mrf.mxu1 }
  0xd3   :  { %v407_v19 = vadd.f32 %v406_v17, %v370_v16 }
  0xd5   :  { %v419_v21 = vadd.f32 %v445_v20, %v407_v19 }
  0xd7   :  { %420 = vst [vmem:[#allocation7] sm:$0xff] %v419_v21 }
  0xd8   :  { %431 = dma.vmem_to_hbm [thread:$0]  %s427_s25, 128, %s429_s28, [#allocation4]  }
  0xd9   :  { %522 = dma.done.wait [#allocation4], 128  }
  0xda   :  { %523 = vsyncadd [#allocation4], 4294967168 }
  0xdb   :  { %436 = vsyncpa [#allocation3], 1 }
  0xdc   :  { %437 = vsyncpa [#allocation6], 1 }
  0xdd   :  { %438 = vsyncpa [#allocation4], 1 }

</bundles_post_ra>
